<compile_context>
chip_gen: v7x
topology: tpu7x:2x2x1
jax: 0.10.0
libtpu: 0.0.40
codegen_flags: <defaults>
</compile_context>

<pallas_src>
import jax
import jax.numpy as jnp
from jax.experimental import pallas as pl
from jax.experimental.pallas import tpu as pltpu

_LANE = 128


def _amp_mlp_kernel(x_ref, w1_ref, b1_ref, w2_ref, b2_ref, o_ref):
    # autocast: matmul inputs in bf16 (weights already bf16 via weight cache),
    # fp32 MXU accumulation, bias + ReLU in the fp32 epilogue, single
    # downcast to bf16 between layers and at the output.
    x_bf16 = x_ref[...].astype(jnp.bfloat16)

    h = jnp.dot(x_bf16, w1_ref[...], preferred_element_type=jnp.float32)
    h = jnp.maximum(h + b1_ref[...].astype(jnp.float32), 0.0)

    y = jnp.dot(h.astype(jnp.bfloat16), w2_ref[...],
                preferred_element_type=jnp.float32)
    y = y + b2_ref[...].astype(jnp.float32)

    o_ref[...] = y.astype(o_ref.dtype)


def _pad_axis(a, axis, multiple):
    pad = (-a.shape[axis]) % multiple
    if pad == 0:
        return a
    cfg = [(0, 0)] * a.ndim
    cfg[axis] = (0, pad)
    return jnp.pad(a, cfg)


def amp_model_forward(x, w1, b1, w2, b2):
    """AMPModel(forward) == inner MLP forward under autocast -> bf16 output."""
    out_features = w2.shape[1]

    # --- autocast weight cache: master params f32, matmul params bf16 -------
    w1_bf16 = w1.astype(jnp.bfloat16)
    b1_bf16 = b1.astype(jnp.bfloat16)
    w2_bf16 = w2.astype(jnp.bfloat16)
    b2_bf16 = b2.astype(jnp.bfloat16)

    # --- lane-dense layout: pad K / hidden / out feature dims to 128 --------
    # (zero padding does not change the matmul result; output sliced after.)
    x_p = _pad_axis(x, 1, _LANE)                                  # (B, Kp)
    w1_p = _pad_axis(_pad_axis(w1_bf16, 0, _LANE), 1, _LANE)      # (Kp, Hp)
    b1_p = _pad_axis(b1_bf16, 1, _LANE)                           # (1, Hp)
    w2_p = _pad_axis(_pad_axis(w2_bf16, 0, _LANE), 1, _LANE)      # (Hp, Np)
    b2_p = _pad_axis(b2_bf16, 1, _LANE)                           # (1, Np)

    b_pad = x_p.shape[0]
    k_pad, h_pad = w1_p.shape
    n_pad = w2_p.shape[1]

    flops = 2 * b_pad * (k_pad * h_pad + h_pad * n_pad)
    bytes_accessed = (
        x_p.size * 4                                   # f32 input
        + (w1_p.size + b1_p.size + w2_p.size + b2_p.size) * 2   # bf16 params
        + b_pad * n_pad * 2                            # bf16 output
    )

    vmem_spec = pl.BlockSpec(memory_space=pltpu.MemorySpace.VMEM)

    out = pl.pallas_call(
        _amp_mlp_kernel,
        out_shape=jax.ShapeDtypeStruct((b_pad, n_pad), jnp.bfloat16),
        in_specs=[vmem_spec] * 5,
        out_specs=vmem_spec,
        cost_estimate=pl.CostEstimate(
            flops=flops, transcendentals=0, bytes_accessed=bytes_accessed),
    )(x_p, w1_p, b1_p, w2_p, b2_p)

    return out[:, :out_features]


if __name__ == "__main__":
    # Deterministic synthetic parameters (this is a wrapper module; no
    # checkpoint exists to load).
    key = jax.random.PRNGKey(0)
    k_x, k_w1, k_b1, k_w2, k_b2 = jax.random.split(key, 5)

    batch, in_features, hidden, out_features = 8, 32, 128, 32

    x = jax.random.normal(k_x, (batch, in_features), dtype=jnp.float32)
    w1 = jax.random.normal(k_w1, (in_features, hidden), dtype=jnp.float32) * 0.05
    b1 = jax.random.normal(k_b1, (1, hidden), dtype=jnp.float32) * 0.01
    w2 = jax.random.normal(k_w2, (hidden, out_features), dtype=jnp.float32) * 0.05
    b2 = jax.random.normal(k_b2, (1, out_features), dtype=jnp.float32) * 0.01

    out = amp_model_forward(x, w1, b1, w2, b2)
    jax.block_until_ready(out)

    # Reference check (plain JAX emulation of autocast with f32 epilogue).
    xb = x.astype(jnp.bfloat16)
    w1b = w1.astype(jnp.bfloat16)
    b1b = b1.astype(jnp.bfloat16)
    w2b = w2.astype(jnp.bfloat16)
    b2b = b2.astype(jnp.bfloat16)

    h_ref = jnp.maximum(
        jnp.dot(xb, w1b, preferred_element_type=jnp.float32)
        + b1b.astype(jnp.float32),
        0.0,
    ).astype(jnp.bfloat16)
    y_ref = (
        jnp.dot(h_ref, w2b, preferred_element_type=jnp.float32)
        + b2b.astype(jnp.float32)
    ).astype(jnp.bfloat16)

    assert out.shape == (batch, out_features)
    assert out.dtype == jnp.bfloat16
    assert jnp.allclose(
        out.astype(jnp.float32), y_ref.astype(jnp.float32), atol=1e-2, rtol=1e-2
    )

    # TODO(synk): GradScaler / backward-pass loss scaling has no forward-pass
    # Pallas equivalent; only the autocast forward semantics are reproduced.
    print("KERNEL_OK")
</pallas_src>

<mosaic_0001>
module attributes {stable_mosaic.version = 11 : i64} {
  func.func @_amp_mlp_kernel(%arg0: memref<8x128xf32, #tpu.memory_space<vmem>>, %arg1: memref<128x128xbf16, #tpu.memory_space<vmem>>, %arg2: memref<1x128xbf16, #tpu.memory_space<vmem>>, %arg3: memref<128x128xbf16, #tpu.memory_space<vmem>>, %arg4: memref<1x128xbf16, #tpu.memory_space<vmem>>, %arg5: memref<8x128xbf16, #tpu.memory_space<vmem>>) attributes {dimension_semantics = [], scalar_prefetch = 0 : i64, scratch_operands = 0 : i64, tpu.core_type = #tpu.core_type<tc>} {
    %c0 = arith.constant 0 : index
    %c0_0 = arith.constant 0 : index
    %0 = vector.load %arg0[%c0, %c0_0] : memref<8x128xf32, #tpu.memory_space<vmem>>, vector<8x128xf32>
    %1 = arith.truncf %0 : vector<8x128xf32> to vector<8x128xbf16>
    %c0_1 = arith.constant 0 : index
    %c0_2 = arith.constant 0 : index
    %2 = vector.load %arg1[%c0_1, %c0_2] : memref<128x128xbf16, #tpu.memory_space<vmem>>, vector<128x128xbf16>
    %cst = arith.constant dense<0.000000e+00> : vector<8x128xf32>
    %3 = tpu.matmul %1, %2, %cst {dimension_numbers = #tpu.dot_dimension_numbers<[1], [0], [0], [1], [0, 0, 1, 1], [], []>} : vector<8x128xbf16>, vector<128x128xbf16>, vector<8x128xf32> -> vector<8x128xf32>
    %c0_3 = arith.constant 0 : index
    %c0_4 = arith.constant 0 : index
    %4 = vector.load %arg2[%c0_3, %c0_4] : memref<1x128xbf16, #tpu.memory_space<vmem>>, vector<1x128xbf16>
    %5 = arith.extf %4 : vector<1x128xbf16> to vector<1x128xf32>
    %6 = vector.broadcast %5 : vector<1x128xf32> to vector<8x128xf32>
    %7 = arith.addf %3, %6 : vector<8x128xf32>
    %cst_5 = arith.constant 0.000000e+00 : f32
    %8 = vector.broadcast %cst_5 : f32 to vector<8x128xf32>
    %9 = arith.maximumf %7, %8 : vector<8x128xf32>
    %10 = arith.truncf %9 : vector<8x128xf32> to vector<8x128xbf16>
    %c0_6 = arith.constant 0 : index
    %c0_7 = arith.constant 0 : index
    %11 = vector.load %arg3[%c0_6, %c0_7] : memref<128x128xbf16, #tpu.memory_space<vmem>>, vector<128x128xbf16>
    %cst_8 = arith.constant dense<0.000000e+00> : vector<8x128xf32>
    %12 = tpu.matmul %10, %11, %cst_8 {dimension_numbers = #tpu.dot_dimension_numbers<[1], [0], [0], [1], [0, 0, 1, 1], [], []>} : vector<8x128xbf16>, vector<128x128xbf16>, vector<8x128xf32> -> vector<8x128xf32>
    %c0_9 = arith.constant 0 : index
    %c0_10 = arith.constant 0 : index
    %13 = vector.load %arg4[%c0_9, %c0_10] : memref<1x128xbf16, #tpu.memory_space<vmem>>, vector<1x128xbf16>
    %14 = arith.extf %13 : vector<1x128xbf16> to vector<1x128xf32>
    %15 = vector.broadcast %14 : vector<1x128xf32> to vector<8x128xf32>
    %16 = arith.addf %12, %15 : vector<8x128xf32>
    %17 = arith.truncf %16 : vector<8x128xf32> to vector<8x128xbf16>
    %c0_11 = arith.constant 0 : index
    %c0_12 = arith.constant 0 : index
    %18 = vector.load %arg5[%c0_11, %c0_12] : memref<8x128xbf16, #tpu.memory_space<vmem>>, vector<8x128xbf16>
    tpu.vector_store %arg5[%c0_11, %c0_12], %17 {strides = array<i32>} : memref<8x128xbf16, #tpu.memory_space<vmem>>, vector<8x128xbf16>,
    return
  }
}

</mosaic_0001>

<bundles_post_ra>
// kernel: tpu_custom_call.1
= control target key start
LH: loop header
LB: loop body
LE: loop exit
PB: predicated region body
PF: predicated region fallthrough
CT: control target
= control target key end

     0   :  { %10 = vsyncpa [#allocation3], 0  ;;  %s593_s0 = inlined_call_operand.hbm [shape: f32[8,128], index: 0, kind: input, shape index: {}]   ;;  %s594_s1 = inlined_call_operand.hbm [shape: bf16[128,128], index: 1, kind: input, shape index: {}]   ;;  %s595_s2 = inlined_call_operand.vmem [shape: bf16[1,128], index: 2, kind: input, shape index: {}]   ;;  %s596_s3 = inlined_call_operand.hbm [shape: bf16[128,128], index: 3, kind: input, shape index: {}]   ;;  %s597_s4 = inlined_call_operand.vmem [shape: bf16[1,128], index: 4, kind: input, shape index: {}]   ;;  %s598_s5 = inlined_call_operand.hbm [shape: bf16[8,128], index: 5, kind: output, shape index: {}]  }
   0x1   :  { %11 = vsyncpa [#allocation6], 0 }
   0x2   :  { %12 = vsyncpa [#allocation4], 0  ;;  %s495_s18 = smov [#allocation5]   ;;  %s401_s22 = scalar_lea.hbm %s594_s1, 1024 }
   0x3   :  { %s28_s19 = sshll.u32 %s495_s18, 4  ;;  %p402_p0 = scmp.ne.s32.totalorder %s594_s1, %s401_s22  ;;  %s29_s19 = int_to_ptr.vmem [resolvable:$true] %s28_s19 }
   0x4   :  { %p405_p1 = scmp.lt.u32.totalorder %s401_s22, %s594_s1 }
   0x6   :  { %p407_p2 = pnand %p405_p1, %p402_p0 }
   0x8   :  { %410 = shalt.err (!%p407_p2)
}
   0x9   :  { %s411_s27 = scalar_lea.vmem %s29_s19, 1024  ;;  %p416_p4 = scmp.lt.s32.totalorder %s29_s19, %s29_s19 }
   0xa   :  { %p412_p3 = scmp.ne.s32.totalorder %s29_s19, %s411_s27  ;;  %p417_p5 = scmp.lt.s32.totalorder %s411_s27, %s411_s27 }
   0xc   :  { %p418_p6 = por %p417_p5, %p416_p4 }
   0xe   :  { %p419_p7 = pnand %p418_p6, %p412_p3 }
  0x10   :  { %422 = shalt.err (!%p419_p7)
}
  0x11   :  { %s496_s28 = smov 64   ;;  %s497_s29 = smov 4  }
  0x12   :  { %34 = dma.hbm_to_vmem [thread:$0]  %s594_s1, 1024, %s29_s19, [#allocation6], %s496_s28, %s496_s28, %s497_s29  }
  0x13   :  { %s498_s7 = smov [#allocation2]   ;;  %s499_s9 = smov [#allocation7]  }
  0x14   :  { %s19_s8 = sshll.u32 %s498_s7, 4  ;;  %s42_s10 = sshll.u32 %s499_s9, 4  ;;  %s20_s8 = int_to_ptr.vmem [resolvable:$true] %s19_s8  ;;  %s43_s10 = int_to_ptr.vmem [resolvable:$true] %s42_s10 }
  0x15   :  { %s423_s13 = scalar_lea.hbm %s593_s0, 128 }
  0x16   :  { %p424_p8 = scmp.ne.s32.totalorder %s593_s0, %s423_s13  ;;  %p427_p9 = scmp.lt.u32.totalorder %s423_s13, %s593_s0 }
  0x18   :  { %p429_p10 = pnand %p427_p9, %p424_p8 }
  0x1a   :  { %432 = shalt.err (!%p429_p10)
}
  0x1b   :  { %s433_s1 = scalar_lea.vmem %s20_s8, 128  ;;  %p438_p12 = scmp.lt.s32.totalorder %s20_s8, %s20_s8 }
  0x1c   :  { %p434_p11 = scmp.ne.s32.totalorder %s20_s8, %s433_s1  ;;  %p439_p13 = scmp.lt.s32.totalorder %s433_s1, %s433_s1 }
  0x1e   :  { %p440_p0 = por %p439_p13, %p438_p12 }
  0x20   :  { %p441_p1 = pnand %p440_p0, %p434_p11 }
  0x22   :  { %444 = shalt.err (!%p441_p1)
}
  0x23   :  { %22 = dma.hbm_to_vmem [thread:$0]  %s593_s0, 128, %s20_s8, [#allocation3]  }
  0x24   :  { %s445_s22 = scalar_lea.hbm %s596_s3, 1024 }
  0x25   :  { %p446_p2 = scmp.ne.s32.totalorder %s596_s3, %s445_s22  ;;  %p449_p3 = scmp.lt.u32.totalorder %s445_s22, %s596_s3 }
  0x27   :  { %p451_p4 = pnand %p449_p3, %p446_p2 }
  0x29   :  { %454 = shalt.err (!%p451_p4)
}
  0x2a   :  { %s455_s27 = scalar_lea.vmem %s43_s10, 1024  ;;  %p460_p6 = scmp.lt.s32.totalorder %s43_s10, %s43_s10 }
  0x2b   :  { %p456_p5 = scmp.ne.s32.totalorder %s43_s10, %s455_s27  ;;  %p461_p7 = scmp.lt.s32.totalorder %s455_s27, %s455_s27 }
  0x2d   :  { %p462_p8 = por %p461_p7, %p460_p6 }
  0x2f   :  { %p463_p9 = pnand %p462_p8, %p456_p5 }
  0x31   :  { %466 = shalt.err (!%p463_p9)
}
  0x32   :  { %48 = dma.hbm_to_vmem [thread:$0]  %s596_s3, 1024, %s43_s10, [#allocation6], %s496_s28, %s496_s28, %s497_s29  }
  0x33   :  { %489 = dma.done.wait [#allocation3], 128  }
  0x34   :  { %490 = vsyncadd [#allocation3], 4294967168 }
  0x35   :  { %491 = dma.done.wait [#allocation6], 2048  }
  0x36   :  { %492 = vsyncadd [#allocation6], 4294965248  ;;  %v500_v0 = vmov 0.0   ;;  %vm501_vm0 = vmmov 0   ;;  %v385_v1 = vld [vmem:[#allocation5] sm:$0xff]   ;;  %v386_v2 = vld [vmem:[#allocation5 + $0x8] sm:$0xff]   ;;  %v81_v19 = vlaneseq }
  0x37   :  { %337 = vmatprep.subr.bf16.mxu0 %v500_v0  ;;  %353 = vmatprep.mubr.msk.bf16.mxu0 %vm501_vm0, %v500_v0  ;;  %v387_v3 = vld [vmem:[#allocation5 + $0x10] sm:$0xff]   ;;  %v393_v4 = vld [vmem:[#allocation7] sm:$0xff]   ;;  %v388_v5 = vld [vmem:[#allocation5 + $0x18] sm:$0xff]   ;;  %s502_s7 = smov [#allocation8]  }
  0x38   :  { %357 = vmatprep.subr.bf16.mxu1 %v500_v0  ;;  %373 = vmatprep.mubr.msk.bf16.mxu1 %vm501_vm0, %v500_v0  ;;  %v394_v6 = vld [vmem:[#allocation7 + $0x8] sm:$0xff]   ;;  %v389_v7 = vld [vmem:[#allocation5 + $0x20] sm:$0xff]   ;;  %v395_v8 = vld [vmem:[#allocation7 + $0x10] sm:$0xff]   ;;  %v82_v20 = vshrl.u32 %v81_v19, 7 }
  0x39   :  { %338 = vmatpush3.bf16.msra.mxu0 %v385_v1  ;;  %358 = vmatpush3.bf16.msra.mxu1 %v393_v4  ;;  %v390_v9 = vld [vmem:[#allocation5 + $0x28] sm:$0xff]   ;;  %v396_v10 = vld [vmem:[#allocation7 + $0x18] sm:$0xff]   ;;  %v391_v11 = vld [vmem:[#allocation5 + $0x30] sm:$0xff]  }
  0x3a   :  { %339 = vmatprep.subr.bf16.mxu0 %v500_v0  ;;  %359 = vmatprep.subr.bf16.mxu1 %v500_v0  ;;  %v397_v12 = vld [vmem:[#allocation7 + $0x20] sm:$0xff]   ;;  %v392_v13 = vld [vmem:[#allocation5 + $0x38] sm:$0xff]   ;;  %v398_v15 = vld [vmem:[#allocation7 + $0x28] sm:$0xff]   ;;  %v83_v23 = vsub.s32 0, %v82_v20 }
  0x3b   :  { %v61_v14 = vld [vmem:[#allocation2] sm:$0xff]  ;;  %v399_v17 = vld [vmem:[#allocation7 + $0x30] sm:$0xff]  }
  0x3c   :  { %v62_v16 = vpack.c.bf16 %v61_v14, %v61_v14  ;;  %v400_v18 = vld [vmem:[#allocation7 + $0x38] sm:$0xff]  }
  0x3d   :  { %340 = vmatpush3.bf16.msra.mxu0 %v386_v2  ;;  %360 = vmatpush3.bf16.msra.mxu1 %v394_v6  ;;  %v79_v21 = vld [vmem:[%s595_s2] sm:$0x1]  ;;  %s293_s2 = sshll.u32 %s502_s7, 4  ;;  %s294_s2 = int_to_ptr.vmem [resolvable:$true] %s293_s2 }
  0x3e   :  { %341 = vmatprep.subr.bf16.mxu0 %v500_v0  ;;  %361 = vmatprep.subr.bf16.mxu1 %v500_v0  ;;  %v80_v22 = vunpack.c.l.bf16 %v79_v21  ;;  %v191_v32 = vld [vmem:[%s597_s4] sm:$0x1]  ;;  %s467_s8 = scalar_lea.vmem %s294_s2, 64  ;;  %p472_p11 = scmp.lt.s32.totalorder %s294_s2, %s294_s2 }
  0x3f   :  { %v192_v33 = vunpack.c.l.bf16 %v191_v32  ;;  %p468_p10 = scmp.ne.s32.totalorder %s294_s2, %s467_s8  ;;  %p473_p12 = scmp.lt.s32.totalorder %s467_s8, %s467_s8 }
  0x40   :  { %v84_v24 = vrot.slane %v80_v22, %v83_v23 }
  0x41   :  { %342 = vmatpush3.bf16.msra.mxu0 %v387_v3  ;;  %362 = vmatpush3.bf16.msra.mxu1 %v395_v8  ;;  %v196_v34 = vrot.slane %v192_v33, %v83_v23  ;;  %p474_p13 = por %p473_p12, %p472_p11 }
  0x42   :  { %343 = vmatprep.subr.bf16.mxu0 %v500_v0  ;;  %363 = vmatprep.subr.bf16.mxu1 %v500_v0 }
  0x43   :  { %p475_p0 = pnand %p474_p13, %p468_p10 }
  0x45   :  { %344 = vmatpush3.bf16.msra.mxu0 %v388_v5  ;;  %364 = vmatpush3.bf16.msra.mxu1 %v396_v10 }
  0x46   :  { %345 = vmatprep.subr.bf16.mxu0 %v500_v0  ;;  %365 = vmatprep.subr.bf16.mxu1 %v500_v0 }
  0x49   :  { %346 = vmatpush3.bf16.msra.mxu0 %v389_v7  ;;  %366 = vmatpush3.bf16.msra.mxu1 %v397_v12 }
  0x4a   :  { %347 = vmatprep.subr.bf16.mxu0 %v500_v0  ;;  %367 = vmatprep.subr.bf16.mxu1 %v500_v0 }
  0x4d   :  { %348 = vmatpush3.bf16.msra.mxu0 %v390_v9  ;;  %368 = vmatpush3.bf16.msra.mxu1 %v398_v15 }
  0x4e   :  { %349 = vmatprep.subr.bf16.mxu0 %v500_v0  ;;  %369 = vmatprep.subr.bf16.mxu1 %v500_v0 }
  0x51   :  { %350 = vmatpush3.bf16.msra.mxu0 %v391_v11  ;;  %370 = vmatpush3.bf16.msra.mxu1 %v399_v17 }
  0x52   :  { %351 = vmatprep.subr.bf16.mxu0 %v500_v0  ;;  %371 = vmatprep.subr.bf16.mxu1 %v500_v0 }
  0x55   :  { %352 = vmatpush3.bf16.msra.mxu0 %v392_v13  ;;  %372 = vmatpush3.bf16.msra.mxu1 %v400_v18 }
  0x58   :  { %354 = vmatmul.mubr.bf16.vlgmr.msra.gmra.mrb[0].mxu0 %v62_v16 }
 0x12b   :  { %v167_v25 = vpop.f32.mrb[0].mxu0 }
 0x12c   :  { %v168_v26 = vadd.f32 %v167_v25, %v84_v24  ;;  %v355_v27 = vpop.f32.mrb[1].mxu0 }
 0x12d   :  { %v170_v28 = vpop.f32.mrb[2].mxu0 }
 0x12e   :  { %v173_v29 = vmax.f32 %v168_v26, 0.0  ;;  %v356_v30 = vpop.f32.mrb[3].mxu0 }
 0x130   :  { %v174_v31 = vpack.c.bf16 %v173_v29, %v173_v29 }
 0x132   :  { %374 = vmatmul.mubr.bf16.vlgmr.msra.gmra.mrb[0].mxu1 %v174_v31 }
 0x205   :  { %v279_v35 = vpop.f32.mrb[0].mxu1 }
 0x206   :  { %v280_v36 = vadd.f32 %v279_v35, %v196_v34  ;;  %v375_v37 = vpop.f32.mrb[1].mxu1 }
 0x207   :  { %v282_v38 = vpop.f32.mrb[2].mxu1 }
 0x208   :  { %v285_v39 = vpack.c.bf16 %v280_v36, %v280_v36  ;;  %v376_v40 = vpop.f32.mrb[3].mxu1 }
 0x20a   :  { %286 = vst [vmem:[#allocation8] sm:$0xf] %v285_v39 }
 0x20b   :  { %478 = shalt.err (!%p475_p0)
}
 0x20c   :  { %s479_s10 = scalar_lea.hbm %s598_s5, 64 }
 0x20d   :  { %p480_p1 = scmp.ne.s32.totalorder %s598_s5, %s479_s10  ;;  %p483_p2 = scmp.lt.u32.totalorder %s479_s10, %s598_s5 }
 0x20f   :  { %p485_p3 = pnand %p483_p2, %p480_p1 }
 0x211   :  { %488 = shalt.err (!%p485_p3)
}
 0x212   :  { %296 = dma.vmem_to_hbm [thread:$0]  %s294_s2, 64, %s598_s5, [#allocation4]  }
 0x213   :  { %493 = dma.done.wait [#allocation4], 64  }
 0x214   :  { %494 = vsyncadd [#allocation4], 4294967232 }
 0x215   :  { %300 = vsyncpa [#allocation3], 1 }
 0x216   :  { %301 = vsyncpa [#allocation6], 1 }
 0x217   :  { %302 = vsyncpa [#allocation4], 1 }

</bundles_post_ra>
